<compile_context>
chip_gen: v7x
topology: tpu7x:2x2x1
jax: 0.10.0
libtpu: 0.0.40
codegen_flags: <defaults>
</compile_context>

<pallas_src>
import jax
import jax.numpy as jnp
from jax.experimental import pallas as pl
from jax.experimental.pallas import tpu as pltpu


_MIB = 1024 * 1024
_TARGET_TILE_BYTES = 4 * _MIB   # ~4 MiB per tile: 2x(in+out) buffers ~16 MiB VMEM
_MIN_SPLIT_BYTES = 2 * _MIB     # only force >=2 tiles (for v7x megacore) above this size


def _round_up(x: int, m: int) -> int:
    return ((x + m - 1) // m) * m


def _sublane(dtype) -> int:
    # Native sublane packing: 8 rows for 32-bit, 16 for bf16/fp16, 32 for int8/fp8.
    return max(8, 32 // jnp.dtype(dtype).itemsize)


def _temp_scale_kernel(temp_ref, x_ref, o_ref):
    # temp_ref: SMEM (1,) f32 scalar; x_ref / o_ref: VMEM (tile_rows, C) tiles.
    inv_t = (1.0 / temp_ref[0]).astype(x_ref.dtype)   # one scalar reciprocal per tile
    o_ref[...] = x_ref[...] * inv_t                   # one VPU multiply per element


def temperature_scale(logits: jax.Array, temperature: jax.Array) -> jax.Array:
    """Compute logits / temperature (scalar temperature broadcast over logits)."""
    orig_shape = logits.shape
    dtype = logits.dtype

    # Present a 2-D (rows, C) view: collapse leading dims, keep the last dim intact
    # so each block covers the full lane axis (no padding, no crop, contiguous DMA).
    if logits.ndim == 0:
        x2d = logits.reshape(1, 1)
    elif logits.ndim == 1:
        x2d = logits.reshape(1, -1)
    else:
        x2d = logits.reshape(-1, orig_shape[-1])
    rows, cols = x2d.shape

    sub = _sublane(dtype)
    itemsize = jnp.dtype(dtype).itemsize
    bytes_per_row = max(cols * itemsize, 1)

    # Row-tile sizing: target ~4 MiB per tile, rounded down to the dtype-native
    # sublane count (minimum one native sublane group).
    tile_rows = max(sub, (_TARGET_TILE_BYTES // bytes_per_row) // sub * sub)
    if tile_rows >= rows:
        total_bytes = rows * bytes_per_row
        if rows >= 2 * sub and total_bytes >= _MIN_SPLIT_BYTES:
            # Keep >= 2 balanced tiles so the "parallel" row axis can shard
            # across v7x's two TensorCores (no-op on v5e/v6e).
            tile_rows = _round_up(pl.cdiv(rows, 2), sub)
        else:
            tile_rows = rows            # single block == full row extent (always legal)

    grid = (pl.cdiv(rows, tile_rows),)  # partial final block allowed; no row padding

    tile_bytes = tile_rows * bytes_per_row
    # Double-buffered in + out plus headroom; stay within v7x's 64 MiB physical VMEM.
    vmem_limit = int(min(64 * _MIB, max(32 * _MIB, 4 * tile_bytes + 2 * _MIB)))

    out2d = pl.pallas_call(
        _temp_scale_kernel,
        out_shape=jax.ShapeDtypeStruct((rows, cols), dtype),
        grid=grid,
        in_specs=[
            pl.BlockSpec(memory_space=pltpu.MemorySpace.SMEM),   # temperature scalar
            pl.BlockSpec((tile_rows, cols), lambda i: (i, 0)),   # logits row tile (full lane width)
        ],
        out_specs=pl.BlockSpec((tile_rows, cols), lambda i: (i, 0)),
        compiler_params=pltpu.CompilerParams(
            dimension_semantics=("parallel",),   # shard row tiles across TCs on v7x
            vmem_limit_bytes=vmem_limit,
        ),
        # NOTE: pass input_output_aliases={1: 0} when the caller no longer needs the
        # raw logits — drops the second full-size HBM allocation (same streamed bytes).
    )(temperature.astype(jnp.float32).reshape(1), x2d)

    return out2d.reshape(orig_shape)


class TemperatureScaling:
    """JAX/Pallas port of the PyTorch TemperatureScaling module (forward only)."""

    def __init__(self):
        # nn.Parameter(torch.ones(1) * 1.5) — deterministic init.
        self.temperature = jnp.ones((1,), dtype=jnp.float32) * 1.5

    def __call__(self, logits):
        return temperature_scale(logits, self.temperature)

    # TODO(synk): set_temperature (LBFGS calibration) and _ECELoss diagnostics are
    # offline fitting / evaluation procedures, not part of the forward hot path;
    # not implemented as Pallas kernels.


if __name__ == "__main__":
    key = jax.random.PRNGKey(0)
    batch, num_classes = 8, 32  # small (N, C) logits consistent with the module
    logits = jax.random.normal(key, (batch, num_classes), dtype=jnp.float32)

    model = TemperatureScaling()
    out = model(logits)
    out = jax.block_until_ready(out)

    # Correctness check against a plain-JAX reference of the PyTorch semantics.
    ref = logits / model.temperature[0]
    assert out.shape == logits.shape and out.dtype == logits.dtype
    assert jnp.allclose(out, ref, rtol=1e-6, atol=1e-6)

    print("KERNEL_OK")
</pallas_src>

<mosaic_0001>
module attributes {stable_mosaic.version = 11 : i64} {
  func.func @_temp_scale_kernel(%arg0: i32, %arg1: memref<1xf32, #tpu.memory_space<smem>>, %arg2: memref<8x32xf32, #tpu.memory_space<vmem>>, %arg3: memref<8x32xf32, #tpu.memory_space<vmem>>) attributes {dimension_semantics = [#tpu.dimension_semantics<parallel>], iteration_bounds = array<i64: 1>, scalar_prefetch = 0 : i64, scratch_operands = 0 : i64, tpu.core_type = #tpu.core_type<tc>, window_params = [{transform_indices = @transform_0, window_bounds = array<i64: 1>}, {transform_indices = @transform_1, window_bounds = array<i64: 8, 32>}, {transform_indices = @transform_2, window_bounds = array<i64: 8, 32>}]} {
    %c0 = arith.constant 0 : index
    %0 = memref.load %arg1[%c0] : memref<1xf32, #tpu.memory_space<smem>>
    %cst = arith.constant 1.000000e+00 : f32
    %1 = arith.divf %cst, %0 : f32
    %c0_0 = arith.constant 0 : index
    %c0_1 = arith.constant 0 : index
    %2 = vector.load %arg2[%c0_0, %c0_1] : memref<8x32xf32, #tpu.memory_space<vmem>>, vector<8x32xf32>
    %3 = vector.broadcast %1 : f32 to vector<8x32xf32>
    %4 = arith.mulf %2, %3 : vector<8x32xf32>
    %c0_2 = arith.constant 0 : index
    %c0_3 = arith.constant 0 : index
    %5 = vector.load %arg3[%c0_2, %c0_3] : memref<8x32xf32, #tpu.memory_space<vmem>>, vector<8x32xf32>
    tpu.vector_store %arg3[%c0_2, %c0_3], %4 {strides = array<i32>} : memref<8x32xf32, #tpu.memory_space<vmem>>, vector<8x32xf32>,
    return
  }
  func.func @transform_0(%arg0: i32) -> i32 {
    %c0_i32 = arith.constant 0 : i32
    %c0_i32_0 = arith.constant 0 : i32
    return %c0_i32 : i32
  }
  func.func @transform_1(%arg0: i32) -> (i32, i32) {
    %c0_i32 = arith.constant 0 : i32
    %c0_i32_0 = arith.constant 0 : i32
    return %arg0, %c0_i32 : i32, i32
  }
  func.func @transform_2(%arg0: i32) -> (i32, i32) {
    %c0_i32 = arith.constant 0 : i32
    %c0_i32_0 = arith.constant 0 : i32
    return %arg0, %c0_i32 : i32, i32
  }
}

</mosaic_0001>

<bundles_post_ra>
// kernel: tpu_custom_call.1
= control target key start
LH: loop header
LB: loop body
LE: loop exit
PB: predicated region body
PF: predicated region fallthrough
CT: control target
= control target key end

     0   :  { %8 = vsyncpa [#allocation4], 0  ;;  %s147_s0 = inlined_call_operand.<no memory space> [shape: f32[1], index: 0, kind: input, shape index: {}]   ;;  %s148_s1 = inlined_call_operand.hbm [shape: f32[8,32], index: 1, kind: input, shape index: {}]   ;;  %s149_s2 = inlined_call_operand.hbm [shape: f32[8,32], index: 2, kind: output, shape index: {}]  }
   0x1   :  { %9 = vsyncpa [#allocation5], 0  ;;  %s103_s9 = smov [#allocation3]   ;;  %s55_s13 = scalar_lea.hbm %s148_s1, 128 }
   0x2   :  { %s18_s10 = sshll.u32 %s103_s9, 4  ;;  %p56_p0 = scmp.ne.s32.totalorder %s148_s1, %s55_s13  ;;  %s19_s10 = int_to_ptr.vmem [resolvable:$true] %s18_s10 }
   0x3   :  { %p59_p1 = scmp.lt.u32.totalorder %s55_s13, %s148_s1 }
   0x5   :  { %p61_p2 = pnand %p59_p1, %p56_p0 }
   0x7   :  { %64 = shalt.err (!%p61_p2)
}
   0x8   :  { %s65_s18 = scalar_lea.vmem %s19_s10, 128  ;;  %p70_p4 = scmp.lt.s32.totalorder %s19_s10, %s19_s10 }
   0x9   :  { %p66_p3 = scmp.ne.s32.totalorder %s19_s10, %s65_s18  ;;  %p71_p5 = scmp.lt.s32.totalorder %s65_s18, %s65_s18 }
   0xb   :  { %p72_p6 = por %p71_p5, %p70_p4 }
   0xd   :  { %p73_p7 = pnand %p72_p6, %p66_p3 }
   0xf   :  { %76 = shalt.err (!%p73_p7)
}
  0x10   :  { %21 = dma.hbm_to_vmem [thread:$0]  %s148_s1, 128, %s19_s10, [#allocation4]   ;;  %v26_v0 = vstv %s147_s0 }
  0x11   :  { %99 = dma.done.wait [#allocation4], 128  }
  0x12   :  { %100 = vsyncadd [#allocation4], 4294967168  ;;  %53 = vrcp.f32 %v26_v0  ;;  %v29_v2 = vld [vmem:[#allocation3] sm:$0xff]  ;;  %s104_s23 = smov [#allocation6]   ;;  %vm32_vm0 = vcmask 261120  }
  0x13   :  { %s40_s24 = sshll.u32 %s104_s23, 4  ;;  %s41_s24 = int_to_ptr.vmem [resolvable:$true] %s40_s24 }
  0x14   :  { %s77_s26 = scalar_lea.vmem %s41_s24, 128  ;;  %p82_p9 = scmp.lt.s32.totalorder %s41_s24, %s41_s24 }
  0x15   :  { %p78_p8 = scmp.ne.s32.totalorder %s41_s24, %s77_s26  ;;  %p83_p10 = scmp.lt.s32.totalorder %s77_s26, %s77_s26 }
  0x17   :  { %p84_p11 = por %p83_p10, %p82_p9 }
  0x19   :  { %p85_p12 = pnand %p84_p11, %p78_p8 }
  0x1c   :  { %v54_v1 = vpop.eup %53 }
  0x1d   :  { %49 = vpush %v54_v1 }
  0x4e   :  { %s50_s25 = spop %49 }
  0x4f   :  { %v30_v3 = vstv %s50_s25 }
  0x50   :  { %v31_v4 = vmul.f32 %v30_v3, %v29_v2 }
  0x52   :  { %33 = vst.msk [vmem:[#allocation6] sm:$0xff] %vm32_vm0, %v31_v4 }
  0x53   :  { %88 = shalt.err (!%p85_p12)
}
  0x54   :  { %s89_s27 = scalar_lea.hbm %s149_s2, 128 }
  0x55   :  { %p90_p13 = scmp.ne.s32.totalorder %s149_s2, %s89_s27  ;;  %p93_p0 = scmp.lt.u32.totalorder %s89_s27, %s149_s2 }
  0x57   :  { %p95_p1 = pnand %p93_p0, %p90_p13 }
  0x59   :  { %98 = shalt.err (!%p95_p1)
}
  0x5a   :  { %43 = dma.vmem_to_hbm [thread:$0]  %s41_s24, 128, %s149_s2, [#allocation5]  }
  0x5b   :  { %101 = dma.done.wait [#allocation5], 128  }
  0x5c   :  { %102 = vsyncadd [#allocation5], 4294967168 }
  0x5d   :  { %47 = vsyncpa [#allocation4], 1 }
  0x5e   :  { %48 = vsyncpa [#allocation5], 1 }

</bundles_post_ra>
